<compile_context>
chip_gen: v6e
topology: v6e:2x2x1
jax: 0.10.0
libtpu: 0.0.40
codegen_flags: <defaults>
</compile_context>

<pallas_src>
import functools

import jax
import jax.numpy as jnp
import numpy as np
from jax import lax
from jax.experimental import pallas as pl
from jax.experimental.pallas import tpu as pltpu


def _convlstm_kernel(p_ref, w_ref, c_ref, h_out_ref, c_out_ref, *, hidden_dim):
    # p_ref : (Kp, TILE_N)   bf16  im2col patches (+ ones row carrying the bias)
    # w_ref : (4*Ch, Kp)     bf16  conv weights; i/f/o rows pre-scaled by 0.5,
    #                              bias folded into column Kd
    # c_ref : (Ch, TILE_N)   f32   current cell state
    # h_out : (Ch, TILE_N)   x.dtype
    # c_out : (Ch, TILE_N)   f32
    Ch = hidden_dim

    # One fused conv-as-matmul on the MXU, f32 accumulation.
    acc = jnp.dot(w_ref[...], p_ref[...], preferred_element_type=jnp.float32)

    # i/f/o rows were pre-scaled by 0.5 in the wrapper, so
    # sigmoid(z) = 0.5 * tanh(z/2) + 0.5 needs no in-kernel scaling.
    # Per-gate (Ch, TILE_N) slices keep the live vreg set small.
    i = 0.5 * jnp.tanh(acc[0 * Ch:1 * Ch, :]) + 0.5
    f = 0.5 * jnp.tanh(acc[1 * Ch:2 * Ch, :]) + 0.5
    o = 0.5 * jnp.tanh(acc[2 * Ch:3 * Ch, :]) + 0.5
    g = jnp.tanh(acc[3 * Ch:4 * Ch, :])

    c_cur = c_ref[...]
    c_next = f * c_cur + i * g
    h_next = o * jnp.tanh(c_next)

    c_out_ref[...] = c_next                                # f32 cell state
    h_out_ref[...] = h_next.astype(h_out_ref.dtype)


def _dual_tensorcore_chip():
    """True on chips with 2 TensorCores (v4/v5p/v7x); False on v5e/v6e."""
    try:
        kind = jax.devices()[0].device_kind.lower()
    except Exception:
        return True  # safe default: an extra parallel grid step is harmless
    single_tc_tags = ("lite", "v5e", "v6e")                # v5e / v6e families
    return not any(tag in kind for tag in single_tc_tags)


@functools.partial(jax.jit, static_argnames=("kernel_size",))
def conv_lstm_cell(x, h_cur, c_cur, weight, bias, *, kernel_size):
    """ConvLSTMCell forward in PyTorch layout.

    x      : (B, Cin, H, W)
    h_cur  : (B, Ch,  H, W)
    c_cur  : (B, Ch,  H, W)
    weight : (4*Ch, Cin+Ch, K, K)   (OIHW, as in nn.Conv2d)
    bias   : (4*Ch,)
    Returns (h_next, c_next), both (B, Ch, H, W); c_next is f32.
    """
    B, Cin, H, W = x.shape
    Ch = h_cur.shape[1]
    K = kernel_size
    pad = K // 2
    C = Cin + Ch
    HW = H * W
    N = B * HW
    Kd = C * K * K
    Kp = ((Kd + 1 + 127) // 128) * 128       # +1 bias row, lane-padded contraction

    # Grid split: 2 parallel steps on dual-TC chips (keeps both TensorCores
    # busy), a single step on single-TC chips (v5e/v6e) to avoid per-step
    # overhead.  Fall back to one full-width step if tiles can't be lane-dense.
    n_tiles = 2 if (_dual_tensorcore_chip() and B % 2 == 0 and B >= 2) else 1
    tile_n = N // n_tiles
    if tile_n % 128 != 0:
        n_tiles, tile_n = 1, N

    # ---- wrapper-side im2col -> (Kp, B*HW), batch folded into lanes --------
    comb = jnp.concatenate([x, h_cur], axis=1).astype(jnp.bfloat16)   # (B,C,H,W)
    comb_p = jnp.pad(comb, ((0, 0), (0, 0), (pad, pad), (pad, pad)))
    taps = [comb_p[:, :, ky:ky + H, kx:kx + W]
            for ky in range(K) for kx in range(K)]                    # K*K x (B,C,H,W)
    patches = jnp.stack(taps, axis=2).reshape(B, Kd, HW)   # row = c*K*K + ky*K + kx
    patches = patches.transpose(1, 0, 2).reshape(Kd, N)    # col = b*HW + hw
    ones_row = jnp.ones((1, N), jnp.bfloat16)               # carries the bias
    patches = jnp.concatenate([patches, ones_row], axis=0)  # (Kd+1, N)
    patches = jnp.pad(patches, ((0, Kp - (Kd + 1)), (0, 0)))  # zero-pad contraction

    # Weights: OIHW -> (4*Ch, C*K*K); append bias column; fold the 0.5 sigmoid
    # scale into the i/f/o rows; pad contraction to Kp; bf16 for the MXU.
    # NOTE: bias rides in the bf16 matmul; its quantization error (~4e-4 abs)
    # is far below the bf16-operand error floor of the matmul itself.
    w2 = jnp.concatenate(
        [weight.reshape(4 * Ch, Kd), bias.reshape(4 * Ch, 1)], axis=1)
    gate_scale = jnp.concatenate(
        [jnp.full((3 * Ch, 1), 0.5, jnp.float32),
         jnp.ones((Ch, 1), jnp.float32)], axis=0)
    w2 = (w2 * gate_scale).astype(jnp.bfloat16)
    w2 = jnp.pad(w2, ((0, 0), (0, Kp - (Kd + 1))))           # (4*Ch, Kp)

    # Cell state channels-first with batch folded into the lane dim: (Ch, B*HW).
    c2 = c_cur.reshape(B, Ch, HW).transpose(1, 0, 2).reshape(Ch, N)
    c2 = c2.astype(jnp.float32)

    kernel = functools.partial(_convlstm_kernel, hidden_dim=Ch)

    grid_spec = pltpu.PrefetchScalarGridSpec(
        num_scalar_prefetch=0,
        grid=(n_tiles,),
        in_specs=[
            pl.BlockSpec((Kp, tile_n), lambda n: (0, n)),     # patches tile
            pl.BlockSpec((4 * Ch, Kp), lambda n: (0, 0)),     # weights, resident
            pl.BlockSpec((Ch, tile_n), lambda n: (0, n)),     # c_cur tile
        ],
        out_specs=[
            pl.BlockSpec((Ch, tile_n), lambda n: (0, n)),     # h_next
            pl.BlockSpec((Ch, tile_n), lambda n: (0, n)),     # c_next
        ],
    )

    h2, c2_next = pl.pallas_call(
        kernel,
        out_shape=(
            jax.ShapeDtypeStruct((Ch, N), x.dtype),
            jax.ShapeDtypeStruct((Ch, N), jnp.float32),
        ),
        grid_spec=grid_spec,
        compiler_params=pltpu.CompilerParams(
            dimension_semantics=("parallel",)),
    )(patches, w2, c2)

    # Back to PyTorch (B, Ch, H, W) layout.
    h_next = h2.reshape(Ch, B, HW).transpose(1, 0, 2).reshape(B, Ch, H, W)
    c_next = c2_next.reshape(Ch, B, HW).transpose(1, 0, 2).reshape(B, Ch, H, W)
    return h_next, c_next


def _reference(x, h_cur, c_cur, weight, bias, *, kernel_size):
    """Pure-JAX reference mirroring the PyTorch forward (NCHW, f32)."""
    pad = kernel_size // 2
    comb = jnp.concatenate([x, h_cur], axis=1)
    conv = lax.conv_general_dilated(
        comb, weight, window_strides=(1, 1),
        padding=((pad, pad), (pad, pad)),
        dimension_numbers=("NCHW", "OIHW", "NCHW"),
        precision=lax.Precision.HIGHEST)
    conv = conv + bias.reshape(1, -1, 1, 1)
    cc_i, cc_f, cc_o, cc_g = jnp.split(conv, 4, axis=1)
    i = jax.nn.sigmoid(cc_i)
    f = jax.nn.sigmoid(cc_f)
    o = jax.nn.sigmoid(cc_o)
    g = jnp.tanh(cc_g)
    c_next = f * c_cur + i * g
    h_next = o * jnp.tanh(c_next)
    return h_next, c_next


if __name__ == "__main__":
    # Small shapes consistent with the module's forward (NCHW, like PyTorch).
    B, H, W = 2, 16, 16
    input_dim, hidden_dim, kernel_size = 4, 32, 3

    key = jax.random.PRNGKey(0)
    k_x, k_h, k_c, k_w, k_b = jax.random.split(key, 5)

    x = jax.random.normal(k_x, (B, input_dim, H, W), dtype=jnp.float32)
    h_cur = jax.random.normal(k_h, (B, hidden_dim, H, W), dtype=jnp.float32)
    c_cur = jax.random.normal(k_c, (B, hidden_dim, H, W), dtype=jnp.float32)

    # Deterministic parameter init (uniform +-1/sqrt(fan_in), like nn.Conv2d).
    fan_in = (input_dim + hidden_dim) * kernel_size * kernel_size
    bound = 1.0 / np.sqrt(fan_in)
    weight = jax.random.uniform(
        k_w, (4 * hidden_dim, input_dim + hidden_dim, kernel_size, kernel_size),
        minval=-bound, maxval=bound, dtype=jnp.float32)
    bias = jax.random.uniform(
        k_b, (4 * hidden_dim,), minval=-bound, maxval=bound, dtype=jnp.float32)

    h_next, c_next = conv_lstm_cell(
        x, h_cur, c_cur, weight, bias, kernel_size=kernel_size)
    jax.block_until_ready((h_next, c_next))

    h_ref, c_ref = _reference(
        x, h_cur, c_cur, weight, bias, kernel_size=kernel_size)
    # bf16 MXU operands (with f32 accumulation) set the error floor (~1e-2 rel).
    np.testing.assert_allclose(np.asarray(h_next), np.asarray(h_ref),
                               atol=2e-2, rtol=2e-2)
    np.testing.assert_allclose(np.asarray(c_next), np.asarray(c_ref),
                               atol=2e-2, rtol=2e-2)

    print("KERNEL_OK")
</pallas_src>

<mosaic_0001>
module attributes {stable_mosaic.version = 11 : i64} {
  func.func @_convlstm_kernel(%arg0: i32, %arg1: memref<384x256xbf16, #tpu.memory_space<vmem>>, %arg2: memref<128x384xbf16, #tpu.memory_space<vmem>>, %arg3: memref<32x256xf32, #tpu.memory_space<vmem>>, %arg4: memref<32x256xf32, #tpu.memory_space<vmem>>, %arg5: memref<32x256xf32, #tpu.memory_space<vmem>>) attributes {dimension_semantics = [#tpu.dimension_semantics<parallel>], iteration_bounds = array<i64: 2>, scalar_prefetch = 0 : i64, scratch_operands = 0 : i64, tpu.core_type = #tpu.core_type<tc>, window_params = [{transform_indices = @transform_0, window_bounds = array<i64: 384, 256>}, {pipeline_mode = #tpu.pipeline_mode<synchronous>, transform_indices = @transform_1, window_bounds = array<i64: 128, 384>}, {transform_indices = @transform_2, window_bounds = array<i64: 32, 256>}, {transform_indices = @transform_3, window_bounds = array<i64: 32, 256>}, {transform_indices = @transform_4, window_bounds = array<i64: 32, 256>}]} {
    %c0 = arith.constant 0 : index
    %c0_0 = arith.constant 0 : index
    %0 = vector.load %arg2[%c0, %c0_0] : memref<128x384xbf16, #tpu.memory_space<vmem>>, vector<128x384xbf16>
    %c0_1 = arith.constant 0 : index
    %c0_2 = arith.constant 0 : index
    %1 = vector.load %arg1[%c0_1, %c0_2] : memref<384x256xbf16, #tpu.memory_space<vmem>>, vector<384x256xbf16>
    %cst = arith.constant dense<0.000000e+00> : vector<128x256xf32>
    %2 = tpu.matmul %0, %1, %cst {dimension_numbers = #tpu.dot_dimension_numbers<[1], [0], [0], [1], [0, 0, 1, 1], [], []>} : vector<128x384xbf16>, vector<384x256xbf16>, vector<128x256xf32> -> vector<128x256xf32>
    %3 = vector.extract_strided_slice %2 {offsets = [0, 0], sizes = [32, 256], strides = [1, 1]} : vector<128x256xf32> to vector<32x256xf32>
    %4 = math.tanh %3 : vector<32x256xf32>
    %cst_3 = arith.constant 5.000000e-01 : f32
    %5 = vector.broadcast %cst_3 : f32 to vector<32x256xf32>
    %6 = arith.mulf %5, %4 : vector<32x256xf32>
    %cst_4 = arith.constant 5.000000e-01 : f32
    %7 = vector.broadcast %cst_4 : f32 to vector<32x256xf32>
    %8 = arith.addf %6, %7 : vector<32x256xf32>
    %9 = vector.extract_strided_slice %2 {offsets = [32, 0], sizes = [32, 256], strides = [1, 1]} : vector<128x256xf32> to vector<32x256xf32>
    %10 = math.tanh %9 : vector<32x256xf32>
    %cst_5 = arith.constant 5.000000e-01 : f32
    %11 = vector.broadcast %cst_5 : f32 to vector<32x256xf32>
    %12 = arith.mulf %11, %10 : vector<32x256xf32>
    %cst_6 = arith.constant 5.000000e-01 : f32
    %13 = vector.broadcast %cst_6 : f32 to vector<32x256xf32>
    %14 = arith.addf %12, %13 : vector<32x256xf32>
    %15 = vector.extract_strided_slice %2 {offsets = [64, 0], sizes = [32, 256], strides = [1, 1]} : vector<128x256xf32> to vector<32x256xf32>
    %16 = math.tanh %15 : vector<32x256xf32>
    %cst_7 = arith.constant 5.000000e-01 : f32
    %17 = vector.broadcast %cst_7 : f32 to vector<32x256xf32>
    %18 = arith.mulf %17, %16 : vector<32x256xf32>
    %cst_8 = arith.constant 5.000000e-01 : f32
    %19 = vector.broadcast %cst_8 : f32 to vector<32x256xf32>
    %20 = arith.addf %18, %19 : vector<32x256xf32>
    %21 = vector.extract_strided_slice %2 {offsets = [96, 0], sizes = [32, 256], strides = [1, 1]} : vector<128x256xf32> to vector<32x256xf32>
    %22 = math.tanh %21 : vector<32x256xf32>
    %c0_9 = arith.constant 0 : index
    %c0_10 = arith.constant 0 : index
    %23 = vector.load %arg3[%c0_9, %c0_10] : memref<32x256xf32, #tpu.memory_space<vmem>>, vector<32x256xf32>
    %24 = arith.mulf %14, %23 : vector<32x256xf32>
    %25 = arith.mulf %8, %22 : vector<32x256xf32>
    %26 = arith.addf %24, %25 : vector<32x256xf32>
    %27 = math.tanh %26 : vector<32x256xf32>
    %28 = arith.mulf %20, %27 : vector<32x256xf32>
    %c0_11 = arith.constant 0 : index
    %c0_12 = arith.constant 0 : index
    %29 = vector.load %arg5[%c0_11, %c0_12] : memref<32x256xf32, #tpu.memory_space<vmem>>, vector<32x256xf32>
    tpu.vector_store %arg5[%c0_11, %c0_12], %26 {strides = array<i32>} : memref<32x256xf32, #tpu.memory_space<vmem>>, vector<32x256xf32>,
    %c0_13 = arith.constant 0 : index
    %c0_14 = arith.constant 0 : index
    %30 = vector.load %arg4[%c0_13, %c0_14] : memref<32x256xf32, #tpu.memory_space<vmem>>, vector<32x256xf32>
    tpu.vector_store %arg4[%c0_13, %c0_14], %28 {strides = array<i32>} : memref<32x256xf32, #tpu.memory_space<vmem>>, vector<32x256xf32>,
    return
  }
  func.func @transform_0(%arg0: i32) -> (i32, i32) {
    %c0_i32 = arith.constant 0 : i32
    %c0_i32_0 = arith.constant 0 : i32
    return %c0_i32, %arg0 : i32, i32
  }
  func.func @transform_1(%arg0: i32) -> (i32, i32) {
    %c0_i32 = arith.constant 0 : i32
    %c0_i32_0 = arith.constant 0 : i32
    %c0_i32_1 = arith.constant 0 : i32
    return %c0_i32, %c0_i32_0 : i32, i32
  }
  func.func @transform_2(%arg0: i32) -> (i32, i32) {
    %c0_i32 = arith.constant 0 : i32
    %c0_i32_0 = arith.constant 0 : i32
    return %c0_i32, %arg0 : i32, i32
  }
  func.func @transform_3(%arg0: i32) -> (i32, i32) {
    %c0_i32 = arith.constant 0 : i32
    %c0_i32_0 = arith.constant 0 : i32
    return %c0_i32, %arg0 : i32, i32
  }
  func.func @transform_4(%arg0: i32) -> (i32, i32) {
    %c0_i32 = arith.constant 0 : i32
    %c0_i32_0 = arith.constant 0 : i32
    return %c0_i32, %arg0 : i32, i32
  }
}

</mosaic_0001>

<bundles_post_ra>
// kernel: conv_lstm_cell.1
= control target key start
LH: loop header
LB: loop body
LE: loop exit
PB: predicated region body
PF: predicated region fallthrough
CT: control target
= control target key end

     0   :  { %s1842_s15 = smov 0   ;;  %s1844_s16 = smov 0   ;;  %s2263_s0 = inlined_call_operand.vmem [shape: bf16[384,512], index: 0, kind: input, shape index: {}]   ;;  %s2264_s1 = inlined_call_operand.vmem [shape: bf16[128,384], index: 1, kind: input, shape index: {}]   ;;  %s2265_s2 = inlined_call_operand.vmem [shape: f32[32,512], index: 2, kind: input, shape index: {}]   ;;  %s2266_s3 = inlined_call_operand.vmem [shape: f32[32,512], index: 3, kind: output, shape index: {0}]   ;;  %s2267_s4 = inlined_call_operand.vmem [shape: f32[32,512], index: 4, kind: output, shape index: {1}]  }
   0x1   :  { %s1846_s17 = smov 0  }
   0x2 LB: > { %s1858_s18 = sadd.s32 4294967295, %s1814_s17   ;;  %s1861_s19 = sadd.s32 1, %s1814_s17   ;;  %s1814_s17 = sphi %s1846_s17, %s2272_s17   ;;  %s1810_s16 = sphi %s1844_s16, %s2271_s16   ;;  %s1806_s15 = sphi %s1842_s15, %s2270_s15  }
   0x3   : > { %s19_s20 = ssub.s32 %s1814_s17, %s1861_s19  ;;  %s22_s21 = sadd.s32 1, %s1810_s16 }
   0x4   : > { %p20_p0 = scmp.eq.s32.totalorder %s19_s20, 0  ;;  %p29_p1 = scmp.ne.s32.totalorder %s1810_s16, %s1806_s15 }
   0x5   : > { %p30_p2 = scmp.eq.s32.totalorder %s1814_s17, 0  ;;  %p106_p3 = scmp.eq.s32.totalorder %s1858_s18, 1 }
   0x6   : > { %s1871_s22 = scalar_select %p20_p0, %s1810_s16, %s22_s21  }
   0x7   : > { %p1873_p4 = por %p30_p2, %p29_p1  ;;  %p1877_p5 = por %p106_p3, %p29_p1 }
   0x8   : > { %p1487_p6 = scmp.ge.s32.totalorder %s1814_s17, 2 }
   0xa   : > { %157 = sbr.rel (%p1487_p6) target bundleno = 51 (0x33), region = 20 }
   0xf   : > { %160 = sbr.rel (!%p1873_p4) target bundleno = 43 (0x2b), region = 24  ;;  %s162_s25 = sand.u32 (%p1873_p4), 1, %s1810_s16  }
  0x10   : > { %s1577_s26 = sshll.u32 (%p1873_p4), %s1814_s17, 3  ;;  %s1581_s27 = smul.u32 (%p1873_p4), 384, %s162_s25 }
  0x11   : > { %s1889_s30 = scalar_lea.vmem (%p1873_p4), %s2263_s0, %s1577_s26 }
  0x12   : > { %v290_v0 = vld [vmem:[%s1889_s30] sm:$0xff] (%p1873_p4)  ;;  %v292_v1 = vld [vmem:[%s1889_s30 + $0x10] sm:$0xff] (%p1873_p4)  ;;  %s1897_s5 = scalar_lea.vmem (%p1873_p4), [#allocation2], %s1581_s27 }
  0x13   : > { %v294_v2 = vld [vmem:[%s1889_s30 + $0x20] sm:$0xff] (%p1873_p4)  ;;  %v296_v3 = vld [vmem:[%s1889_s30 + $0x30] sm:$0xff] (%p1873_p4)  ;;  %291 = vst [vmem:[%s1897_s5] sm:$0xff] (%p1873_p4), %v290_v0  ;;  %293 = vst [vmem:[%s1897_s5 + $0x8] sm:$0xff] (%p1873_p4), %v292_v1 }
  0x14   : > { %v298_v4 = vld [vmem:[%s1889_s30 + $0x40] sm:$0xff]  ;;  %v300_v5 = vld [vmem:[%s1889_s30 + $0x50] sm:$0xff]  ;;  %295 = vst [vmem:[%s1897_s5 + $0x10] sm:$0xff] %v294_v2  ;;  %297 = vst [vmem:[%s1897_s5 + $0x18] sm:$0xff] %v296_v3 }
  0x15   : > { %299 = vst [vmem:[%s1897_s5 + $0x20] sm:$0xff] %v298_v4  ;;  %301 = vst [vmem:[%s1897_s5 + $0x28] sm:$0xff] %v300_v5  ;;  %v302_v6 = vld [vmem:[%s1889_s30 + $0x60] sm:$0xff]  ;;  %v304_v7 = vld [vmem:[%s1889_s30 + $0x70] sm:$0xff] }
  0x16   : > { %v306_v8 = vld [vmem:[%s1889_s30 + $0x80] sm:$0xff]  ;;  %303 = vst [vmem:[%s1897_s5 + $0x30] sm:$0xff] %v302_v6  ;;  %305 = vst [vmem:[%s1897_s5 + $0x38] sm:$0xff] %v304_v7  ;;  %v308_v9 = vld [vmem:[%s1889_s30 + $0x90] sm:$0xff] }
  0x17   : > { %307 = vst [vmem:[%s1897_s5 + $0x40] sm:$0xff] %v306_v8  ;;  %v310_v10 = vld [vmem:[%s1889_s30 + $0xa0] sm:$0xff]  ;;  %v312_v11 = vld [vmem:[%s1889_s30 + $0xb0] sm:$0xff]  ;;  %309 = vst [vmem:[%s1897_s5 + $0x48] sm:$0xff] %v308_v9 }
  0x18   : > { %311 = vst [vmem:[%s1897_s5 + $0x50] sm:$0xff] %v310_v10  ;;  %313 = vst [vmem:[%s1897_s5 + $0x58] sm:$0xff] %v312_v11  ;;  %v314_v12 = vld [vmem:[%s1889_s30 + $0xc0] sm:$0xff]  ;;  %v316_v13 = vld [vmem:[%s1889_s30 + $0xd0] sm:$0xff] }
  0x19   : > { %v318_v14 = vld [vmem:[%s1889_s30 + $0xe0] sm:$0xff]  ;;  %315 = vst [vmem:[%s1897_s5 + $0x60] sm:$0xff] %v314_v12  ;;  %317 = vst [vmem:[%s1897_s5 + $0x68] sm:$0xff] %v316_v13  ;;  %v320_v15 = vld [vmem:[%s1889_s30 + $0xf0] sm:$0xff] }
  0x1a   : > { %319 = vst [vmem:[%s1897_s5 + $0x70] sm:$0xff] %v318_v14  ;;  %v322_v16 = vld [vmem:[%s1889_s30 + $0x100] sm:$0xff]  ;;  %v324_v17 = vld [vmem:[%s1889_s30 + $0x110] sm:$0xff]  ;;  %321 = vst [vmem:[%s1897_s5 + $0x78] sm:$0xff] %v320_v15 }
  0x1b   : > { %323 = vst [vmem:[%s1897_s5 + $0x80] sm:$0xff] %v322_v16  ;;  %325 = vst [vmem:[%s1897_s5 + $0x88] sm:$0xff] %v324_v17  ;;  %v326_v18 = vld [vmem:[%s1889_s30 + $0x120] sm:$0xff]  ;;  %v328_v19 = vld [vmem:[%s1889_s30 + $0x130] sm:$0xff] }
  0x1c   : > { %v330_v20 = vld [vmem:[%s1889_s30 + $0x140] sm:$0xff]  ;;  %327 = vst [vmem:[%s1897_s5 + $0x90] sm:$0xff] %v326_v18  ;;  %329 = vst [vmem:[%s1897_s5 + $0x98] sm:$0xff] %v328_v19  ;;  %v332_v21 = vld [vmem:[%s1889_s30 + $0x150] sm:$0xff] }
  0x1d   : > { %331 = vst [vmem:[%s1897_s5 + $0xa0] sm:$0xff] %v330_v20  ;;  %v334_v22 = vld [vmem:[%s1889_s30 + $0x160] sm:$0xff]  ;;  %v336_v23 = vld [vmem:[%s1889_s30 + $0x170] sm:$0xff]  ;;  %333 = vst [vmem:[%s1897_s5 + $0xa8] sm:$0xff] %v332_v21 }
  0x1e   : > { %335 = vst [vmem:[%s1897_s5 + $0xb0] sm:$0xff] %v334_v22  ;;  %337 = vst [vmem:[%s1897_s5 + $0xb8] sm:$0xff] %v336_v23  ;;  %v338_v24 = vld [vmem:[%s1889_s30 + $0x180] sm:$0xff]  ;;  %v340_v25 = vld [vmem:[%s1889_s30 + $0x190] sm:$0xff] }
  0x1f   : > { %v342_v26 = vld [vmem:[%s1889_s30 + $0x1a0] sm:$0xff]  ;;  %339 = vst [vmem:[%s1897_s5 + $0xc0] sm:$0xff] %v338_v24  ;;  %341 = vst [vmem:[%s1897_s5 + $0xc8] sm:$0xff] %v340_v25  ;;  %v344_v27 = vld [vmem:[%s1889_s30 + $0x1b0] sm:$0xff] }
  0x20   : > { %343 = vst [vmem:[%s1897_s5 + $0xd0] sm:$0xff] %v342_v26  ;;  %v346_v28 = vld [vmem:[%s1889_s30 + $0x1c0] sm:$0xff]  ;;  %v348_v29 = vld [vmem:[%s1889_s30 + $0x1d0] sm:$0xff]  ;;  %345 = vst [vmem:[%s1897_s5 + $0xd8] sm:$0xff] %v344_v27 }
  0x21   : > { %347 = vst [vmem:[%s1897_s5 + $0xe0] sm:$0xff] %v346_v28  ;;  %349 = vst [vmem:[%s1897_s5 + $0xe8] sm:$0xff] %v348_v29  ;;  %v350_v30 = vld [vmem:[%s1889_s30 + $0x1e0] sm:$0xff]  ;;  %v352_v31 = vld [vmem:[%s1889_s30 + $0x1f0] sm:$0xff] }
  0x22   : > { %v354_v32 = vld [vmem:[%s1889_s30 + $0x200] sm:$0xff]  ;;  %351 = vst [vmem:[%s1897_s5 + $0xf0] sm:$0xff] %v350_v30  ;;  %353 = vst [vmem:[%s1897_s5 + $0xf8] sm:$0xff] %v352_v31  ;;  %v356_v33 = vld [vmem:[%s1889_s30 + $0x210] sm:$0xff] }
  0x23   : > { %355 = vst [vmem:[%s1897_s5 + $0x100] sm:$0xff] %v354_v32  ;;  %v358_v34 = vld [vmem:[%s1889_s30 + $0x220] sm:$0xff]  ;;  %v360_v35 = vld [vmem:[%s1889_s30 + $0x230] sm:$0xff]  ;;  %357 = vst [vmem:[%s1897_s5 + $0x108] sm:$0xff] %v356_v33 }
  0x24   : > { %359 = vst [vmem:[%s1897_s5 + $0x110] sm:$0xff] %v358_v34  ;;  %361 = vst [vmem:[%s1897_s5 + $0x118] sm:$0xff] %v360_v35  ;;  %v362_v36 = vld [vmem:[%s1889_s30 + $0x240] sm:$0xff]  ;;  %v364_v37 = vld [vmem:[%s1889_s30 + $0x250] sm:$0xff] }
  0x25   : > { %v366_v38 = vld [vmem:[%s1889_s30 + $0x260] sm:$0xff]  ;;  %363 = vst [vmem:[%s1897_s5 + $0x120] sm:$0xff] %v362_v36  ;;  %365 = vst [vmem:[%s1897_s5 + $0x128] sm:$0xff] %v364_v37  ;;  %v368_v39 = vld [vmem:[%s1889_s30 + $0x270] sm:$0xff] }
  0x26   : > { %367 = vst [vmem:[%s1897_s5 + $0x130] sm:$0xff] %v366_v38  ;;  %v370_v40 = vld [vmem:[%s1889_s30 + $0x280] sm:$0xff]  ;;  %v372_v41 = vld [vmem:[%s1889_s30 + $0x290] sm:$0xff]  ;;  %369 = vst [vmem:[%s1897_s5 + $0x138] sm:$0xff] %v368_v39 }
  0x27   : > { %371 = vst [vmem:[%s1897_s5 + $0x140] sm:$0xff] %v370_v40  ;;  %373 = vst [vmem:[%s1897_s5 + $0x148] sm:$0xff] %v372_v41  ;;  %v374_v42 = vld [vmem:[%s1889_s30 + $0x2a0] sm:$0xff]  ;;  %v376_v43 = vld [vmem:[%s1889_s30 + $0x2b0] sm:$0xff] }
  0x28   : > { %v378_v44 = vld [vmem:[%s1889_s30 + $0x2c0] sm:$0xff]  ;;  %375 = vst [vmem:[%s1897_s5 + $0x150] sm:$0xff] %v374_v42  ;;  %377 = vst [vmem:[%s1897_s5 + $0x158] sm:$0xff] %v376_v43  ;;  %v380_v45 = vld [vmem:[%s1889_s30 + $0x2d0] sm:$0xff] }
  0x29   : > { %379 = vst [vmem:[%s1897_s5 + $0x160] sm:$0xff] %v378_v44  ;;  %v382_v46 = vld [vmem:[%s1889_s30 + $0x2e0] sm:$0xff]  ;;  %v384_v47 = vld [vmem:[%s1889_s30 + $0x2f0] sm:$0xff]  ;;  %381 = vst [vmem:[%s1897_s5 + $0x168] sm:$0xff] %v380_v45 }
  0x2a   : > { %383 = vst [vmem:[%s1897_s5 + $0x170] sm:$0xff] %v382_v46  ;;  %385 = vst [vmem:[%s1897_s5 + $0x178] sm:$0xff] %v384_v47 }
  0x2b PF: > { %391 = sbr.rel (!%p1873_p4) target bundleno = 51 (0x33), region = 62  ;;  %s393_s6 = sand.u32 (%p1873_p4), 1, %s1810_s16  }
  0x2c   : > { %s1578_s7 = sshll.u32 (%p1873_p4), %s1814_s17, 4  ;;  %s1490_s8 = sshll.u32 (%p1873_p4), %s393_s6, 6 }
  0x2d   : > { %s398_s11 = scalar_lea.vmem (%p1873_p4), %s2265_s2, %s1578_s7  ;;  %s395_s12 = scalar_lea.vmem (%p1873_p4), [#allocation3], %s1490_s8 }
  0x2e   : > { %v411_v48 = vld [vmem:[%s398_s11] sm:$0xff] (%p1873_p4)  ;;  %v413_v49 = vld [vmem:[%s398_s11 + $0x8] sm:$0xff] (%p1873_p4) }
  0x2f   : > { %v415_v50 = vld [vmem:[%s398_s11 + $0x20] sm:$0xff] (%p1873_p4)  ;;  %412 = vst [vmem:[%s395_s12] sm:$0xff] (%p1873_p4), %v411_v48  ;;  %414 = vst [vmem:[%s395_s12 + $0x8] sm:$0xff] (%p1873_p4), %v413_v49  ;;  %v417_v51 = vld [vmem:[%s398_s11 + $0x28] sm:$0xff] (%p1873_p4) }
  0x30   : > { %416 = vst [vmem:[%s395_s12 + $0x10] sm:$0xff] %v415_v50  ;;  %v419_v52 = vld [vmem:[%s398_s11 + $0x40] sm:$0xff]  ;;  %v421_v53 = vld [vmem:[%s398_s11 + $0x48] sm:$0xff]  ;;  %418 = vst [vmem:[%s395_s12 + $0x18] sm:$0xff] %v417_v51 }
  0x31   : > { %420 = vst [vmem:[%s395_s12 + $0x20] sm:$0xff] %v419_v52  ;;  %422 = vst [vmem:[%s395_s12 + $0x28] sm:$0xff] %v421_v53  ;;  %v423_v54 = vld [vmem:[%s398_s11 + $0x60] sm:$0xff]  ;;  %v425_v55 = vld [vmem:[%s398_s11 + $0x68] sm:$0xff] }
  0x32   : > { %424 = vst [vmem:[%s395_s12 + $0x30] sm:$0xff] %v423_v54  ;;  %426 = vst [vmem:[%s395_s12 + $0x38] sm:$0xff] %v425_v55 }
  0x33 PF: > { %p1493_p7 = scmp.ge.s32.totalorder %s1814_s17, 1  ;;  %p431_p8 = scmp.lt.s32.totalorder %s1814_s17, 3 }
  0x35   : > { %p432_p9 = pnand %p1493_p7, %p431_p8 }
  0x36   : > { %s438_s13 = sand.u32 (!%p432_p9), 1, %s1806_s15  }
  0x37   : > { %435 = sbr.rel (%p432_p9) target bundleno = 432 (0x1b0), region = 85  ;;  %s2176_s6 = sshll.u32 (!%p432_p9), %s438_s13, 6 }
  0x38   : > { %s1582_s14 = smul.u32 (!%p432_p9), 384, %s438_s13  ;;  %s2183_s15 = scalar_lea.vmem (!%p432_p9), [#allocation3], %s2176_s6 }
  0x39   : > { %s2201_s13 = scalar_lea.vmem (!%p432_p9), [#allocation5], %s2176_s6  ;;  %s2215_s7 = scalar_lea.vmem (!%p432_p9), [#allocation4], %s2176_s6 }
  0x3a   : > { %s2005_s23 = scalar_lea.vmem (!%p432_p9), [#allocation2], %s1582_s14 }
  0x3c   : > { %v1816_v56 = vmov 0   ;;  %v1683_v57 = vld [vmem:[%s2264_s1 + $0x4] ss:$12 sps:$4 sm:$0xff]   ;;  %v1608_v58 = vld [vmem:[%s2005_s23 + $0x74] ss:$8 sps:$4 sm:$0xff]   ;;  %s1579_s8 = sshll.u32 (%p1877_p5), %s1858_s18, 4 }
  0x3d   : > { %1075 = vmatprep.mubr.bf16.mxu1 %v1816_v56  ;;  %962 = vmatprep.mubr.bf16.mxu0 %v1683_v57  ;;  %v1610_v59 = vld [vmem:[%s2005_s23 + $0x70] ss:$8 sps:$4 sm:$0xff]   ;;  %v1611_v60 = vld [vmem:[%s2005_s23 + $0x64] ss:$8 sps:$4 sm:$0xff]   ;;  %v1613_v61 = vld [vmem:[%s2005_s23 + $0x60] ss:$8 sps:$4 sm:$0xff]   ;;  %s1313_s11 = scalar_lea.vmem (%p1877_p5), %s2266_s3, %s1579_s8 }
  0x3e   : > { %930 = vmatprep.subr.bf16.mxu0 %v1608_v58  ;;  %v1614_v62 = vld [vmem:[%s2005_s23 + $0x54] ss:$8 sps:$4 sm:$0xff]   ;;  %v1616_v63 = vld [vmem:[%s2005_s23 + $0x50] ss:$8 sps:$4 sm:$0xff]   ;;  %v1617_v0 = vld [vmem:[%s2005_s23 + $0x44] ss:$8 sps:$4 sm:$0xff]  }
  0x3f   : > { %931 = vmatpush1.bf16.msra.mxu0 %v1610_v59  ;;  %v1629_v1 = vld [vmem:[%s2005_s23 + $0x174] ss:$8 sps:$4 sm:$0xff]   ;;  %v1631_v2 = vld [vmem:[%s2005_s23 + $0x170] ss:$8 sps:$4 sm:$0xff]   ;;  %v1619_v3 = vld [vmem:[%s2005_s23 + $0x40] ss:$8 sps:$4 sm:$0xff]  }
  0x40   : > { %932 = vmatprep.subr.bf16.mxu0 %v1611_v60  ;;  %v1620_v4 = vld [vmem:[%s2005_s23 + $0x34] ss:$8 sps:$4 sm:$0xff]   ;;  %1043 = vmatprep.subr.bf16.mxu1 %v1629_v1  ;;  %v1635_v5 = vld [vmem:[%s2005_s23 + $0x164] ss:$8 sps:$4 sm:$0xff]   ;;  %v1637_v6 = vld [vmem:[%s2005_s23 + $0x160] ss:$8 sps:$4 sm:$0xff]  }
  0x41   : > { %1044 = vmatpush1.bf16.msra.mxu1 %v1631_v2  ;;  %v1622_v7 = vld [vmem:[%s2005_s23 + $0x30] ss:$8 sps:$4 sm:$0xff]   ;;  %v1641_v8 = vld [vmem:[%s2005_s23 + $0x154] ss:$8 sps:$4 sm:$0xff]   ;;  %v1623_v9 = vld [vmem:[%s2005_s23 + $0x24] ss:$8 sps:$4 sm:$0xff]  }
  0x42   : > { %1045 = vmatprep.subr.bf16.mxu1 %v1635_v5  ;;  %v1643_v10 = vld [vmem:[%s2005_s23 + $0x150] ss:$8 sps:$4 sm:$0xff]   ;;  %v1647_v11 = vld [vmem:[%s2005_s23 + $0x144] ss:$8 sps:$4 sm:$0xff]   ;;  %v1625_v12 = vld [vmem:[%s2005_s23 + $0x20] ss:$8 sps:$4 sm:$0xff]  }
  0x43   : > { %933 = vmatpush1.bf16.msra.mxu0 %v1613_v61  ;;  %v1626_v13 = vld [vmem:[%s2005_s23 + $0x14] ss:$8 sps:$4 sm:$0xff]   ;;  %v1649_v14 = vld [vmem:[%s2005_s23 + $0x140] ss:$8 sps:$4 sm:$0xff]   ;;  %v1628_v16 = vld [vmem:[%s2005_s23 + $0x10] ss:$8 sps:$4 sm:$0xff]  }
  0x44   : > { %934 = vmatprep.subr.bf16.mxu0 %v1614_v62  ;;  %v1653_v15 = vld [vmem:[%s2005_s23 + $0x134] ss:$8 sps:$4 sm:$0xff]   ;;  %v1632_v17 = vld [vmem:[%s2005_s23 + $0x4] ss:$8 sps:$4 sm:$0xff]   ;;  %v1655_v18 = vld [vmem:[%s2005_s23 + $0x130] ss:$8 sps:$4 sm:$0xff]  }
  0x45   : > { %1046 = vmatpush1.bf16.msra.mxu1 %v1637_v6  ;;  %v1659_v19 = vld [vmem:[%s2005_s23 + $0x124] ss:$8 sps:$4 sm:$0xff]   ;;  %v1634_v20 = vld [vmem:[%s2005_s23] ss:$8 sps:$4 sm:$0xff]   ;;  %v1638_v21 = vld [vmem:[%s2005_s23 + $0xf4] ss:$8 sps:$4 sm:$0xff]  }
  0x46   : > { %1047 = vmatprep.subr.bf16.mxu1 %v1641_v8  ;;  %v1661_v22 = vld [vmem:[%s2005_s23 + $0x120] ss:$8 sps:$4 sm:$0xff]   ;;  %v1665_v23 = vld [vmem:[%s2005_s23 + $0x114] ss:$8 sps:$4 sm:$0xff]   ;;  %v1640_v24 = vld [vmem:[%s2005_s23 + $0xf0] ss:$8 sps:$4 sm:$0xff]  }
  0x47   : > { %935 = vmatpush1.bf16.msra.mxu0 %v1616_v63  ;;  %v1644_v25 = vld [vmem:[%s2005_s23 + $0xe4] ss:$8 sps:$4 sm:$0xff]   ;;  %v1667_v26 = vld [vmem:[%s2005_s23 + $0x110] ss:$8 sps:$4 sm:$0xff]   ;;  %v1646_v28 = vld [vmem:[%s2005_s23 + $0xe0] ss:$8 sps:$4 sm:$0xff]  }
  0x48   : > { %936 = vmatprep.subr.bf16.mxu0 %v1617_v0  ;;  %v1671_v27 = vld [vmem:[%s2005_s23 + $0x104] ss:$8 sps:$4 sm:$0xff]   ;;  %v1650_v29 = vld [vmem:[%s2005_s23 + $0xd4] ss:$8 sps:$4 sm:$0xff]   ;;  %v1673_v30 = vld [vmem:[%s2005_s23 + $0x100] ss:$8 sps:$4 sm:$0xff]  }
  0x49   : > { %1048 = vmatpush1.bf16.msra.mxu1 %v1643_v10  ;;  %v1652_v31 = vld [vmem:[%s2005_s23 + $0xd0] ss:$8 sps:$4 sm:$0xff]   ;;  %v1677_v32 = vld [vmem:[%s2264_s1 + $0x8] ss:$12 sps:$4 sm:$0xff]   ;;  %v1656_v33 = vld [vmem:[%s2005_s23 + $0xc4] ss:$8 sps:$4 sm:$0xff]  }
  0x4a   : > { %1049 = vmatprep.subr.bf16.mxu1 %v1647_v11  ;;  %v1658_v34 = vld [vmem:[%s2005_s23 + $0xc0] ss:$8 sps:$4 sm:$0xff]   ;;  %v1662_v35 = vld [vmem:[%s2005_s23 + $0xb4] ss:$8 sps:$4 sm:$0xff]   ;;  %v1664_v36 = vld [vmem:[%s2005_s23 + $0xb0] ss:$8 sps:$4 sm:$0xff]  }
  0x4b   : > { %937 = vmatpush1.bf16.msra.mxu0 %v1619_v3  ;;  %v1668_v37 = vld [vmem:[%s2005_s23 + $0xa4] ss:$8 sps:$4 sm:$0xff]   ;;  %v1670_v39 = vld [vmem:[%s2005_s23 + $0xa0] ss:$8 sps:$4 sm:$0xff]   ;;  %v1674_v40 = vld [vmem:[%s2005_s23 + $0x94] ss:$8 sps:$4 sm:$0xff]  }
  0x4c   : > { %938 = vmatprep.subr.bf16.mxu0 %v1620_v4  ;;  %v1684_v38 = vld [vmem:[%s2264_s1 + $0x20] ss:$12 sps:$4 sm:$0xff]   ;;  %v1676_v41 = vld [vmem:[%s2005_s23 + $0x90] ss:$8 sps:$4 sm:$0xff]   ;;  %v1685_v46 = vld [vmem:[%s2264_s1 + $0x1c] ss:$12 sps:$4 sm:$0xff]  }
  0x4d   : > { %1050 = vmatpush1.bf16.msra.mxu1 %v1649_v14  ;;  %v1678_v42 = vld [vmem:[%s2005_s23 + $0x84] ss:$8 sps:$4 sm:$0xff]   ;;  %v1680_v44 = vld [vmem:[%s2005_s23 + $0x80] ss:$8 sps:$4 sm:$0xff]   ;;  %v1692_v47 = vld [vmem:[%s2264_s1 + $0x50] ss:$12 sps:$4 sm:$0xff]  }
  0x4e   : > { %1051 = vmatprep.subr.bf16.mxu1 %v1653_v15  ;;  %v1688_v43 = vld [vmem:[%s2264_s1 + $0x38] ss:$12 sps:$4 sm:$0xff]   ;;  %v1681_v45 = vld [vmem:[%s2264_s1] ss:$12 sps:$4 sm:$0xff]   ;;  %v1696_v50 = vld [vmem:[%s2264_s1 + $0x68] ss:$12 sps:$4 sm:$0xff]  }
  0x4f   : > { %939 = vmatpush1.bf16.msra.mxu0 %v1622_v7  ;;  %v1687_v48 = vld [vmem:[%s2264_s1 + $0x18] ss:$12 sps:$4 sm:$0xff]   ;;  %v1689_v49 = vld [vmem:[%s2264_s1 + $0x34] ss:$12 sps:$4 sm:$0xff]   ;;  %v1691_v51 = vld [vmem:[%s2264_s1 + $0x30] ss:$12 sps:$4 sm:$0xff]  }
  0x50   : > { %940 = vmatprep.subr.bf16.mxu0 %v1623_v9  ;;  %v1693_v52 = vld [vmem:[%s2264_s1 + $0x4c] ss:$12 sps:$4 sm:$0xff]   ;;  %v1695_v54 = vld [vmem:[%s2264_s1 + $0x48] ss:$12 sps:$4 sm:$0xff]   ;;  %v1697_v55 = vld [vmem:[%s2264_s1 + $0x64] ss:$12 sps:$4 sm:$0xff]  }
  0x51   : > { %1052 = vmatpush1.bf16.msra.mxu1 %v1655_v18  ;;  %v1700_v53 = vld [vmem:[%s2264_s1 + $0x80] ss:$12 sps:$4 sm:$0xff]   ;;  %v1704_v57 = vld [vmem:[%s2264_s1 + $0x98] ss:$12 sps:$4 sm:$0xff]   ;;  %v1701_v59 = vld [vmem:[%s2264_s1 + $0x7c] ss:$12 sps:$4 sm:$0xff]  }
  0x52   : > { %1053 = vmatprep.subr.bf16.mxu1 %v1659_v19  ;;  %v1699_v58 = vld [vmem:[%s2264_s1 + $0x60] ss:$12 sps:$4 sm:$0xff]   ;;  %v1708_v60 = vld [vmem:[%s2264_s1 + $0xb0] ss:$12 sps:$4 sm:$0xff]   ;;  %v1703_v61 = vld [vmem:[%s2264_s1 + $0x78] ss:$12 sps:$4 sm:$0xff]  }
  0x53   : > { %941 = vmatpush1.bf16.msra.mxu0 %v1625_v12  ;;  %v1707_v62 = vld [vmem:[%s2264_s1 + $0x90] ss:$12 sps:$4 sm:$0xff]   ;;  %v1709_v63 = vld [vmem:[%s2264_s1 + $0xac] ss:$12 sps:$4 sm:$0xff]   ;;  %v1711_v0 = vld [vmem:[%s2264_s1 + $0xa8] ss:$12 sps:$4 sm:$0xff]  }
  0x54   : > { %942 = vmatprep.subr.bf16.mxu0 %v1626_v13 }
  0x55   : > { %1054 = vmatpush1.bf16.msra.mxu1 %v1661_v22 }
  0x56   : > { %1055 = vmatprep.subr.bf16.mxu1 %v1665_v23 }
  0x57   : > { %943 = vmatpush1.bf16.msra.mxu0 %v1628_v16 }
  0x58   : > { %944 = vmatprep.subr.bf16.mxu0 %v1632_v17 }
  0x59   : > { %1056 = vmatpush1.bf16.msra.mxu1 %v1667_v26 }
  0x5a   : > { %1057 = vmatprep.subr.bf16.mxu1 %v1671_v27 }
  0x5b   : > { %945 = vmatpush1.bf16.msra.mxu0 %v1634_v20 }
  0x5c   : > { %946 = vmatprep.subr.bf16.mxu0 %v1638_v21 }
  0x5d   : > { %1058 = vmatpush1.bf16.msra.mxu1 %v1673_v30 }
  0x5f   : > { %947 = vmatpush2.bf16.msra.mxu0 %v1640_v24 }
  0x60   : > { %948 = vmatprep.subr.bf16.mxu0 %v1644_v25  ;;  %1076 = vmatmul.mubr.bf16.vlgmr.msra.gmra.mxu1 %v1677_v32 }
  0x61   : > { %1085 = vmatprep.mubr.bf16.mxu1 %v1816_v56 }
  0x63   : > { %949 = vmatpush2.bf16.msra.mxu0 %v1646_v28 }
  0x64   : > { %950 = vmatprep.subr.bf16.mxu0 %v1650_v29 }
  0x67   : > { %951 = vmatpush2.bf16.msra.mxu0 %v1652_v31 }
  0x68   : > { %952 = vmatprep.subr.bf16.mxu0 %v1656_v33  ;;  %1086 = vmatmul.mubr.bf16.gmra.mxu1 %v1684_v38 }
  0x69   : > { %1095 = vmatprep.mubr.bf16.mxu1 %v1816_v56 }
  0x6b   : > { %953 = vmatpush2.bf16.msra.mxu0 %v1658_v34 }
  0x6c   : > { %954 = vmatprep.subr.bf16.mxu0 %v1662_v35 }
  0x6f   : > { %955 = vmatpush2.bf16.msra.mxu0 %v1664_v36 }
  0x70   : > { %956 = vmatprep.subr.bf16.mxu0 %v1668_v37  ;;  %1096 = vmatmul.mubr.bf16.gmra.mxu1 %v1688_v43 }
  0x71   : > { %1105 = vmatprep.mubr.bf16.mxu1 %v1816_v56 }
  0x73   : > { %957 = vmatpush2.bf16.msra.mxu0 %v1670_v39 }
  0x74   : > { %958 = vmatprep.subr.bf16.mxu0 %v1674_v40 }
  0x77   : > { %959 = vmatpush2.bf16.msra.mxu0 %v1676_v41 }
  0x78   : > { %960 = vmatprep.subr.bf16.mxu0 %v1678_v42  ;;  %1106 = vmatmul.mubr.bf16.gmra.mxu1 %v1692_v47 }
  0x79   : > { %1115 = vmatprep.mubr.bf16.mxu1 %v1816_v56 }
  0x7b   : > { %961 = vmatpush2.bf16.msra.mxu0 %v1680_v44 }
  0x7e   : > { %963 = vmatmul.mubr.bf16.vlgmr.msra.gmra.mxu0 %v1681_v45 }
  0x7f   : > { %972 = vmatprep.mubr.bf16.mxu0 %v1685_v46 }
  0x80   : > { %1116 = vmatmul.mubr.bf16.gmra.mxu1 %v1696_v50 }
  0x81   : > { %1125 = vmatprep.mubr.bf16.mxu1 %v1816_v56 }
  0x86   : > { %973 = vmatmul.mubr.bf16.gmra.mxu0 %v1687_v48 }
  0x87   : > { %982 = vmatprep.mubr.bf16.mxu0 %v1689_v49 }
  0x88   : > { %1126 = vmatmul.mubr.bf16.gmra.mxu1 %v1700_v53 }
  0x89   : > { %1135 = vmatprep.mubr.bf16.mxu1 %v1816_v56 }
  0x8e   : > { %983 = vmatmul.mubr.bf16.gmra.mxu0 %v1691_v51 }
  0x8f   : > { %992 = vmatprep.mubr.bf16.mxu0 %v1693_v52 }
  0x90   : > { %1136 = vmatmul.mubr.bf16.gmra.mxu1 %v1704_v57 }
  0x91   : > { %1145 = vmatprep.mubr.bf16.mxu1 %v1816_v56  ;;  %v1705_v56 = vld [vmem:[%s2264_s1 + $0x94] ss:$12 sps:$4 sm:$0xff]  }
  0x96   : > { %993 = vmatmul.mubr.bf16.gmra.mxu0 %v1695_v54 }
  0x97   : > { %1002 = vmatprep.mubr.bf16.mxu0 %v1697_v55 }
  0x98   : > { %1146 = vmatmul.mubr.bf16.gmra.mxu1 %v1708_v60 }
  0x9e   : > { %1003 = vmatmul.mubr.bf16.gmra.mxu0 %v1699_v58 }
  0x9f   : > { %1012 = vmatprep.mubr.bf16.mxu0 %v1701_v59 }
  0xa6   : > { %1013 = vmatmul.mubr.bf16.gmra.mxu0 %v1703_v61 }
  0xa7   : > { %1022 = vmatprep.mubr.bf16.mxu0 %v1705_v56 }
  0xae   : > { %1023 = vmatmul.mubr.bf16.gmra.mxu0 %v1707_v62 }
  0xaf   : > { %1032 = vmatprep.mubr.bf16.mxu0 %v1709_v63 }
  0xb6   : > { %1033 = vmatmul.mubr.bf16.gmra.mxu0 %v1711_v0 }
 0x120   : > { %v1077_v1 = vpop.f32.mrf.mxu1 }
 0x122   : > { %v1079_v2 = vpop.f32.mrf.mxu1 }
 0x124   : > { %v1081_v3 = vpop.f32.mrf.mxu1 }
 0x126   : > { %v1083_v4 = vpop.f32.mrf.mxu1 }
 0x128   : > { %v1087_v5 = vpop.f32.mrf.mxu1 }
 0x12a   : > { %v1089_v6 = vpop.f32.mrf.mxu1 }
 0x12c   : > { %v2131_v7 = vpop.f32.mrf.mxu1 }
 0x12e   : > { %v2133_v8 = vpop.f32.mrf.mxu1 }
 0x130   : > { %v1097_v9 = vpop.f32.mrf.mxu1 }
 0x132   : > { %v1099_v10 = vpop.f32.mrf.mxu1 }
 0x134   : > { %v1101_v11 = vpop.f32.mrf.mxu1 }
 0x136   : > { %v1103_v13 = vpop.f32.mrf.mxu1 }
 0x138   : > { %v1107_v15 = vpop.f32.mrf.mxu1 }
 0x13a   : > { %v1109_v17 = vpop.f32.mrf.mxu1 }
 0x13c   : > { %v1111_v19 = vpop.f32.mrf.mxu1 }
 0x13e   : > { %v964_v12 = vpop.f32.mrf.mxu0  ;;  %v1113_v21 = vpop.f32.mrf.mxu1 }
 0x13f   : > { %v1078_v42 = vadd.f32 %v1077_v1, %v964_v12 }
 0x140   : > { %v966_v14 = vpop.f32.mrf.mxu0  ;;  %v2135_v23 = vpop.f32.mrf.mxu1 }
 0x141   : > { %v1080_v43 = vadd.f32 %v1079_v2, %v966_v14  ;;  %1712 = vtanh.f32 %v1078_v42 }
 0x142   : > { %v968_v16 = vpop.f32.mrf.mxu0  ;;  %v2137_v25 = vpop.f32.mrf.mxu1 }
 0x143   : > { %v1082_v46 = vadd.f32 %v1081_v3, %v968_v16  ;;  %1714 = vtanh.f32 %v1080_v43 }
 0x144   : > { %v970_v18 = vpop.f32.mrf.mxu0  ;;  %v2141_v27 = vpop.f32.mrf.mxu1 }
 0x145   : > { %v1084_v47 = vadd.f32 %v1083_v4, %v970_v18  ;;  %1716 = vtanh.f32 %v1082_v46 }
 0x146   : > { %v974_v20 = vpop.f32.mrf.mxu0  ;;  %v2143_v29 = vpop.f32.mrf.mxu1 }
 0x147   : > { %1718 = vtanh.f32 %v1084_v47  ;;  %v1088_v54 = vadd.f32 %v1087_v5, %v974_v20 }
 0x148   : > { %v976_v22 = vpop.f32.mrf.mxu0  ;;  %v2145_v31 = vpop.f32.mrf.mxu1 }
 0x149   : > { %v1090_v60 = vadd.f32 %v1089_v6, %v976_v22 }
 0x14a   : > { %v978_v24 = vpop.f32.mrf.mxu0  ;;  %v2147_v34 = vpop.f32.mrf.mxu1 }
 0x14b   : > { %v1092_v62 = vadd.f32 %v2131_v7, %v978_v24 }
 0x14c   : > { %v2139_v26 = vpop.f32.mrf.mxu0  ;;  %v2149_v37 = vpop.f32.mrf.mxu1 }
 0x14e   : > { %v984_v28 = vpop.f32.mrf.mxu0  ;;  %v2151_v40 = vpop.f32.mrf.mxu1 }
 0x14f   : > { %v1098_v49 = vadd.f32 %v1097_v9, %v984_v28  ;;  %v1713_v4 = vpop.eup %1712 }
 0x150   : > { %v986_v30 = vpop.f32.mrf.mxu0  ;;  %v1137_v45 = vpop.f32.mrf.mxu1 }
 0x151   : > { %v1100_v50 = vadd.f32 %v1099_v10, %v986_v30  ;;  %1720 = vtanh.f32 %v1098_v49 }
 0x152   : > { %v988_v32 = vpop.f32.mrf.mxu0  ;;  %v1139_v52 = vpop.f32.mrf.mxu1 }
 0x153   : > { %v1102_v53 = vadd.f32 %v1101_v11, %v988_v32  ;;  %1722 = vtanh.f32 %v1100_v50  ;;  %v1715_v11 = vpop.eup %1714 }
 0x154   : > { %v990_v33 = vpop.f32.mrf.mxu0  ;;  %v1141_v59 = vpop.f32.mrf.mxu1  ;;  %v1165_v28 = vmul.f32 0.5, %v1715_v11 }
 0x155   : > { %v1104_v57 = vadd.f32 %v1103_v13, %v990_v33  ;;  %1724 = vtanh.f32 %v1102_v53  ;;  %v1717_v7 = vpop.eup %1716  ;;  %v1094_v13 = vadd.f32 %v2133_v8, %v2139_v26 }
 0x156   : > { %v994_v35 = vpop.f32.mrf.mxu0  ;;  %1726 = vtanh.f32 %v1088_v54  ;;  %v1143_v1 = vpop.f32.mrf.mxu1  ;;  %v1166_v32 = vmul.f32 0.5, %v1717_v7  ;;  %v1173_v49 = vadd.f32 0.5, %v1165_v28 }
 0x157   : > { %v1108_v61 = vadd.f32 %v1107_v15, %v994_v35  ;;  %1728 = vtanh.f32 %v1104_v57  ;;  %v1719_v15 = vpop.eup %1718 }
 0x158   : > { %v996_v36 = vpop.f32.mrf.mxu0  ;;  %1730 = vtanh.f32 %v1090_v60  ;;  %v1147_v10 = vpop.f32.mrf.mxu1  ;;  %v1167_v33 = vmul.f32 0.5, %v1719_v15  ;;  %v1174_v57 = vadd.f32 0.5, %v1166_v32 }
 0x159   : > { %v1110_v63 = vadd.f32 %v1109_v17, %v996_v36  ;;  %1732 = vtanh.f32 %v1108_v61 }
 0x15a   : > { %v998_v38 = vpop.f32.mrf.mxu0  ;;  %1734 = vtanh.f32 %v1092_v62  ;;  %v1149_v18 = vpop.f32.mrf.mxu1 }
 0x15b   : > { %v1112_v2 = vadd.f32 %v1111_v19, %v998_v38  ;;  %1736 = vtanh.f32 %v1110_v63 }
 0x15c   : > { %v1000_v39 = vpop.f32.mrf.mxu0  ;;  %v1151_v42 = vpop.f32.mrf.mxu1 }
 0x15d   : > { %v1114_v5 = vadd.f32 %v1113_v21, %v1000_v39  ;;  %1738 = vtanh.f32 %v1112_v2  ;;  %v1164_v21 = vmul.f32 0.5, %v1713_v4 }
 0x15e   : > { %v2153_v41 = vpop.f32.mrf.mxu0  ;;  %v1721_v17 = vpop.eup %1720 }
 0x15f   : > { %v1118_v8 = vadd.f32 %v2135_v23, %v2153_v41  ;;  %v1188_v36 = vmul.f32 0.5, %v1721_v17  ;;  %v1172_v46 = vadd.f32 0.5, %v1164_v21  ;;  %v1153_v63 = vpop.f32.mrf.mxu1  ;;  %v1239_v21 = vld [vmem:[%s2183_s15 + $0x18] sm:$0xff] }
 0x160   : > { %v2155_v44 = vpop.f32.mrf.mxu0  ;;  %v1723_v20 = vpop.eup %1722 }
 0x161   : > { %v1189_v38 = vmul.f32 0.5, %v1723_v20  ;;  %v1120_v39 = vadd.f32 %v2137_v25, %v2155_v44  ;;  %v1196_v60 = vadd.f32 0.5, %v1188_v36 }
 0x162   : > { %v2157_v48 = vpop.f32.mrf.mxu0  ;;  %v1725_v24 = vpop.eup %1724 }
 0x163   : > { %v1727_v30 = vpop.eup %1726  ;;  %v1190_v47 = vmul.f32 0.5, %v1725_v24  ;;  %v1197_v61 = vadd.f32 0.5, %v1189_v38 }
 0x164   : > { %v2159_v51 = vpop.f32.mrf.mxu0  ;;  %v1168_v50 = vmul.f32 0.5, %v1727_v30 }
 0x165   : > { %v1124_v4 = vadd.f32 %v2143_v29, %v2159_v51 }
 0x166   : > { %v2161_v55 = vpop.f32.mrf.mxu0 }
 0x168   : > { %v2163_v58 = vpop.f32.mrf.mxu0 }
 0x169   : > { %v1130_v15 = vadd.f32 %v2147_v34, %v2163_v58 }
 0x16a   : > { %v2165_v56 = vpop.f32.mrf.mxu0 }
 0x16b   : > { %v1132_v34 = vadd.f32 %v2149_v37, %v2165_v56 }
 0x16c   : > { %v2168_v0 = vpop.f32.mrf.mxu0 }
 0x16d   : > { %v1134_v38 = vadd.f32 %v2151_v40, %v2168_v0 }
 0x16e   : > { %v1024_v3 = vpop.f32.mrf.mxu0 }
 0x16f   : > { %v1138_v6 = vadd.f32 %v1137_v45, %v1024_v3  ;;  %v1729_v45 = vpop.eup %1728  ;;  %v1198_v3 = vadd.f32 0.5, %v1190_v47  ;;  %v1241_v47 = vld [vmem:[%s2183_s15 + $0x28] sm:$0xff] }
 0x170   : > { %v1026_v9 = vpop.f32.mrf.mxu0  ;;  %v1731_v41 = vpop.eup %1730  ;;  %v1191_v62 = vmul.f32 0.5, %v1729_v45 }
 0x171   : > { %v1140_v12 = vadd.f32 %v1139_v52, %v1026_v9  ;;  %1740 = vtanh.f32 %v1138_v6  ;;  %v1122_v52 = vadd.f32 %v2141_v27, %v2157_v48  ;;  %v1733_v54 = vpop.eup %1732  ;;  %v1236_v27 = vld [vmem:[%s2183_s15] sm:$0xff]  ;;  %v1237_v48 = vld [vmem:[%s2183_s15 + $0x8] sm:$0xff]  ;;  %v1176_v9 = vadd.f32 0.5, %v1168_v50 }
 0x172   : > { %v1028_v14 = vpop.f32.mrf.mxu0  ;;  %v1735_v44 = vpop.eup %1734  ;;  %v1192_v11 = vmul.f32 0.5, %v1733_v54  ;;  %v1244_v29 = vmul.f32 %v1236_v27, %v1196_v60  ;;  %v1245_v51 = vmul.f32 %v1237_v48, %v1197_v61  ;;  %v1199_v17 = vadd.f32 0.5, %v1191_v62 }
 0x173   : > { %1742 = vtanh.f32 %v1140_v12  ;;  %v1142_v16 = vadd.f32 %v1141_v59, %v1028_v14  ;;  %v1175_v59 = vadd.f32 0.5, %v1167_v33  ;;  %v1737_v2 = vpop.eup %1736  ;;  %v1128_v12 = vadd.f32 %v2145_v31, %v2161_v55 }
 0x174   : > { %1744 = vtanh.f32 %v1114_v5  ;;  %v1030_v19 = vpop.f32.mrf.mxu0  ;;  %v1739_v6 = vpop.eup %1738  ;;  %v1170_v14 = vmul.f32 0.5, %v1735_v44  ;;  %v1200_v55 = vadd.f32 0.5, %v1192_v11 }
 0x175   : > { %1746 = vtanh.f32 %v1142_v16  ;;  %v1144_v22 = vadd.f32 %v1143_v1, %v1030_v19 }
 0x176   : > { %1748 = vtanh.f32 %v1094_v13  ;;  %v1034_v26 = vpop.f32.mrf.mxu0  ;;  %v1169_v13 = vmul.f32 0.5, %v1731_v41  ;;  %v1178_v50 = vadd.f32 0.5, %v1170_v14 }
 0x177   : > { %1750 = vtanh.f32 %v1144_v22  ;;  %v1148_v35 = vadd.f32 %v1147_v10, %v1034_v26  ;;  %v1238_v10 = vld [vmem:[%s2183_s15 + $0x10] sm:$0xff]  ;;  %v1193_v22 = vmul.f32 0.5, %v1737_v2  ;;  %v1194_v26 = vmul.f32 0.5, %v1739_v6 }
 0x178   : > { %v1036_v43 = vpop.f32.mrf.mxu0  ;;  %v1246_v20 = vmul.f32 %v1238_v10, %v1198_v3 }
 0x179   : > { %1752 = vtanh.f32 %v1148_v35  ;;  %v1150_v23 = vadd.f32 %v1149_v18, %v1036_v43  ;;  %v1247_v35 = vmul.f32 %v1239_v21, %v1199_v17  ;;  %v1201_v37 = vadd.f32 0.5, %v1193_v22 }
 0x17a   : > { %1754 = vtanh.f32 %v1118_v8  ;;  %v1038_v53 = vpop.f32.mrf.mxu0  ;;  %v1240_v8 = vld [vmem:[%s2183_s15 + $0x20] sm:$0xff]  ;;  %v1177_v43 = vadd.f32 0.5, %v1169_v13  ;;  %v1202_v0 = vadd.f32 0.5, %v1194_v26 }
 0x17b   : > { %1756 = vtanh.f32 %v1150_v23  ;;  %v1152_v25 = vadd.f32 %v1151_v42, %v1038_v53 }
 0x17c   : > { %1758 = vtanh.f32 %v1120_v39  ;;  %v1040_v1 = vpop.f32.mrf.mxu0 }
 0x17d   : > { %1760 = vtanh.f32 %v1152_v25  ;;  %v1154_v5 = vadd.f32 %v1153_v63, %v1040_v1 }
 0x17e   : > { %1762 = vtanh.f32 %v1122_v52  ;;  %v1741_v7 = vpop.eup %1740  ;;  %v1242_v52 = vld [vmem:[%s2183_s15 + $0x30] sm:$0xff] }
 0x17f   : > { %1764 = vtanh.f32 %v1154_v5  ;;  %v1252_v18 = vmul.f32 %v1741_v7, %v1172_v46  ;;  %v1248_v46 = vmul.f32 %v1240_v8, %v1200_v55  ;;  %v1250_v63 = vmul.f32 %v1242_v52, %v1202_v0 }
 0x180   : > { %v1743_v16 = vpop.eup %1742  ;;  %1766 = vtanh.f32 %v1124_v4 }
 0x181   : > { %v1745_v19 = vpop.eup %1744  ;;  %v1253_v24 = vmul.f32 %v1743_v16, %v1173_v49  ;;  %1768 = vtanh.f32 %v1128_v12  ;;  %v1260_v58 = vadd.f32 %v1252_v18, %v1244_v29 }
 0x182   : > { %v1747_v31 = vpop.eup %1746  ;;  %1770 = vtanh.f32 %v1130_v15  ;;  %v1195_v36 = vmul.f32 0.5, %v1745_v19 }
 0x183   : > { %v1749_v28 = vpop.eup %1748  ;;  %v1261_v30 = vadd.f32 %v1253_v24, %v1245_v51  ;;  %v1254_v32 = vmul.f32 %v1747_v31, %v1174_v57  ;;  %1772 = vtanh.f32 %v1260_v58  ;;  %1284 = vst [vmem:[%s2201_s13] sm:$0xff] %v1260_v58  ;;  %v1249_v57 = vmul.f32 %v1241_v47, %v1201_v37 }
 0x184   : > { %v1751_v33 = vpop.eup %1750  ;;  %v1171_v45 = vmul.f32 0.5, %v1749_v28  ;;  %v1203_v53 = vadd.f32 0.5, %v1195_v36 }
 0x185   : > { %1774 = vtanh.f32 %v1261_v30  ;;  %1285 = vst [vmem:[%s2201_s13 + $0x8] sm:$0xff] %v1261_v30  ;;  %v1262_v56 = vadd.f32 %v1254_v32, %v1246_v20  ;;  %v1255_v39 = vmul.f32 %v1751_v33, %v1175_v59  ;;  %v1243_v59 = vld [vmem:[%s2183_s15 + $0x38] sm:$0xff] }
 0x186   : > { %v1753_v42 = vpop.eup %1752  ;;  %1776 = vtanh.f32 %v1132_v34  ;;  %v1179_v61 = vadd.f32 0.5, %v1171_v45  ;;  %v1251_v48 = vmul.f32 %v1243_v59, %v1203_v53 }
 0x187   : > { %v1755_v40 = vpop.eup %1754  ;;  %1778 = vtanh.f32 %v1262_v56  ;;  %1286 = vst [vmem:[%s2201_s13 + $0x10] sm:$0xff] %v1262_v56  ;;  %v1263_v23 = vadd.f32 %v1255_v39, %v1247_v35  ;;  %v1256_v41 = vmul.f32 %v1753_v42, %v1176_v9 }
 0x188   : > { %v1757_v49 = vpop.eup %1756  ;;  %1780 = vtanh.f32 %v1134_v38  ;;  %v1212_v3 = vmul.f32 0.5, %v1755_v40 }
 0x189   : > { %v1759_v54 = vpop.eup %1758  ;;  %1782 = vtanh.f32 %v1263_v23  ;;  %1287 = vst [vmem:[%s2201_s13 + $0x18] sm:$0xff] %v1263_v23  ;;  %v1264_v25 = vadd.f32 %v1256_v41, %v1248_v46  ;;  %v1257_v44 = vmul.f32 %v1757_v49, %v1177_v43 }
 0x18a   : > { %v1761_v60 = vpop.eup %1760  ;;  %v1213_v4 = vmul.f32 0.5, %v1759_v54  ;;  %v1220_v13 = vadd.f32 0.5, %v1212_v3 }
 0x18b   : > { %v1763_v62 = vpop.eup %1762  ;;  %1784 = vtanh.f32 %v1264_v25  ;;  %1288 = vst [vmem:[%s2201_s13 + $0x20] sm:$0xff] %v1264_v25  ;;  %v1265_v1 = vadd.f32 %v1257_v44, %v1249_v57  ;;  %v1258_v2 = vmul.f32 %v1761_v60, %v1178_v50 }
 0x18c   : > { %v1765_v27 = vpop.eup %1764  ;;  %v1214_v11 = vmul.f32 0.5, %v1763_v62  ;;  %v1221_v15 = vadd.f32 0.5, %v1213_v4 }
 0x18d   : > { %1786 = vtanh.f32 %v1265_v1  ;;  %1289 = vst [vmem:[%s2201_s13 + $0x28] sm:$0xff] %v1265_v1  ;;  %v1266_v5 = vadd.f32 %v1258_v2, %v1250_v63  ;;  %v1259_v6 = vmul.f32 %v1765_v27, %v1179_v61  ;;  %v1767_v9 = vpop.eup %1766 }
 0x18e   : > { %v1769_v10 = vpop.eup %1768  ;;  %v1215_v16 = vmul.f32 0.5, %v1767_v9  ;;  %v1222_v18 = vadd.f32 0.5, %v1214_v11 }
 0x18f   : > { %1788 = vtanh.f32 %v1266_v5  ;;  %1290 = vst [vmem:[%s2201_s13 + $0x30] sm:$0xff] %v1266_v5  ;;  %v1267_v12 = vadd.f32 %v1259_v6, %v1251_v48  ;;  %v1771_v7 = vpop.eup %1770  ;;  %v1216_v19 = vmul.f32 0.5, %v1769_v10 }
 0x190   : > { %v1773_v14 = vpop.eup %1772  ;;  %v1223_v24 = vadd.f32 0.5, %v1215_v16  ;;  %v1217_v31 = vmul.f32 0.5, %v1771_v7 }
 0x191   : > { %1790 = vtanh.f32 %v1267_v12  ;;  %1291 = vst [vmem:[%s2201_s13 + $0x38] sm:$0xff] %v1267_v12  ;;  %v1276_v51 = vmul.f32 %v1773_v14, %v1220_v13  ;;  %v1224_v58 = vadd.f32 0.5, %v1216_v19 }
 0x192   : > { %v1775_v29 = vpop.eup %1774  ;;  %v1225_v30 = vadd.f32 0.5, %v1217_v31 }
 0x193   : > { %v1777_v17 = vpop.eup %1776  ;;  %v1277_v20 = vmul.f32 %v1775_v29, %v1221_v15  ;;  %1292 = vst [vmem:[%s2215_s7] sm:$0xff] %v1276_v51 }
 0x194   : > { %v1779_v21 = vpop.eup %1778  ;;  %v1218_v28 = vmul.f32 0.5, %v1777_v17 }
 0x195   : > { %v1781_v22 = vpop.eup %1780  ;;  %1293 = vst [vmem:[%s2215_s7 + $0x8] sm:$0xff] %v1277_v20  ;;  %v1278_v55 = vmul.f32 %v1779_v21, %v1222_v18 }
 0x196   : > { %v1783_v34 = vpop.eup %1782  ;;  %v1219_v32 = vmul.f32 0.5, %v1781_v22  ;;  %v1226_v36 = vadd.f32 0.5, %v1218_v28 }
 0x197   : > { %1294 = vst [vmem:[%s2215_s7 + $0x10] sm:$0xff] %v1278_v55  ;;  %v1279_v8 = vmul.f32 %v1783_v34, %v1223_v24 }
 0x198   : > { %v1785_v26 = vpop.eup %1784  ;;  %v1227_v56 = vadd.f32 0.5, %v1219_v32 }
 0x199   : > { %1295 = vst [vmem:[%s2215_s7 + $0x18] sm:$0xff] %v1279_v8  ;;  %v1280_v33 = vmul.f32 %v1785_v26, %v1224_v58 }
 0x19a   : > { %v1787_v35 = vpop.eup %1786  ;;  %v1326_v45 = vld [vmem:[%s2215_s7] sm:$0xff] (%p1877_p5) }
 0x19b   : > { %1296 = vst [vmem:[%s2215_s7 + $0x20] sm:$0xff] %v1280_v33  ;;  %v1281_v38 = vmul.f32 %v1787_v35, %v1225_v30  ;;  %1327 = vst [vmem:[%s1313_s11] sm:$0xff] (%p1877_p5), %v1326_v45 }
 0x19c   : > { %v1789_v37 = vpop.eup %1788  ;;  %v1328_v46 = vld [vmem:[%s2215_s7 + $0x8] sm:$0xff] (%p1877_p5) }
 0x19d   : > { %1297 = vst [vmem:[%s2215_s7 + $0x28] sm:$0xff] %v1281_v38  ;;  %v1282_v39 = vmul.f32 %v1789_v37, %v1226_v36  ;;  %1310 = sbr.rel (!%p1877_p5) target bundleno = 426 (0x1aa), region = 97  ;;  %1329 = vst [vmem:[%s1313_s11 + $0x8] sm:$0xff] (%p1877_p5), %v1328_v46 }
 0x19e   : > { %v1791_v42 = vpop.eup %1790  ;;  %v1330_v47 = vld [vmem:[%s2215_s7 + $0x10] sm:$0xff] (%p1877_p5) }
 0x19f   : > { %1298 = vst [vmem:[%s2215_s7 + $0x30] sm:$0xff] %v1282_v39  ;;  %v1283_v43 = vmul.f32 %v1791_v42, %v1227_v56  ;;  %1331 = vst [vmem:[%s1313_s11 + $0x20] sm:$0xff] (%p1877_p5), %v1330_v47 }
 0x1a0   : > { %v1332_v40 = vld [vmem:[%s2215_s7 + $0x18] sm:$0xff] (%p1877_p5) }
 0x1a1   : > { %1299 = vst [vmem:[%s2215_s7 + $0x38] sm:$0xff] %v1283_v43  ;;  %1333 = vst [vmem:[%s1313_s11 + $0x28] sm:$0xff] (%p1877_p5), %v1332_v40 }
 0x1a2   : > { %v1334_v0 = vld [vmem:[%s2215_s7 + $0x20] sm:$0xff] }
 0x1a3   : > { %1335 = vst [vmem:[%s1313_s11 + $0x40] sm:$0xff] %v1334_v0 }
 0x1a4   : > { %v1336_v23 = vld [vmem:[%s2215_s7 + $0x28] sm:$0xff] }
 0x1a5   : > { %1337 = vst [vmem:[%s1313_s11 + $0x48] sm:$0xff] %v1336_v23 }
 0x1a6   : > { %v1338_v41 = vld [vmem:[%s2215_s7 + $0x30] sm:$0xff] }
 0x1a7   : > { %1339 = vst [vmem:[%s1313_s11 + $0x60] sm:$0xff] %v1338_v41 }
 0x1a8   : > { %v1340_v49 = vld [vmem:[%s2215_s7 + $0x38] sm:$0xff] }
 0x1a9   : > { %1341 = vst [vmem:[%s1313_s11 + $0x68] sm:$0xff] %v1340_v49 }
 0x1aa PF: > { %1347 = sbr.rel (!%p1877_p5) target bundleno = 432 (0x1b0), region = 120  ;;  %s1580_s12 = sshll.u32 (%p1877_p5), %s1858_s18, 4  ;;  %v1363_v50 = vld [vmem:[%s2201_s13] sm:$0xff] (%p1877_p5)  ;;  %v1365_v52 = vld [vmem:[%s2201_s13 + $0x8] sm:$0xff] (%p1877_p5)  ;;  %v1367_v53 = vld [vmem:[%s2201_s13 + $0x10] sm:$0xff] (%p1877_p5) }
 0x1ab   : > { %s1350_s21 = scalar_lea.vmem (%p1877_p5), %s2267_s4, %s1580_s12  ;;  %v1369_v54 = vld [vmem:[%s2201_s13 + $0x18] sm:$0xff] (%p1877_p5)  ;;  %v1371_v57 = vld [vmem:[%s2201_s13 + $0x20] sm:$0xff] (%p1877_p5)  ;;  %v1373_v59 = vld [vmem:[%s2201_s13 + $0x28] sm:$0xff] (%p1877_p5) }
 0x1ac   : > { %1364 = vst [vmem:[%s1350_s21] sm:$0xff] (%p1877_p5), %v1363_v50  ;;  %1366 = vst [vmem:[%s1350_s21 + $0x8] sm:$0xff] (%p1877_p5), %v1365_v52  ;;  %v1375_v25 = vld [vmem:[%s2201_s13 + $0x30] sm:$0xff] (%p1877_p5)  ;;  %v1377_v44 = vld [vmem:[%s2201_s13 + $0x38] sm:$0xff] (%p1877_p5) }
 0x1ad   : > { %1368 = vst [vmem:[%s1350_s21 + $0x20] sm:$0xff] (%p1877_p5), %v1367_v53  ;;  %1370 = vst [vmem:[%s1350_s21 + $0x28] sm:$0xff] (%p1877_p5), %v1369_v54 }
 0x1ae   : > { %1372 = vst [vmem:[%s1350_s21 + $0x40] sm:$0xff] (%p1877_p5), %v1371_v57  ;;  %1374 = vst [vmem:[%s1350_s21 + $0x48] sm:$0xff] (%p1877_p5), %v1373_v59 }
 0x1af   : > { %1376 = vst [vmem:[%s1350_s21 + $0x60] sm:$0xff] %v1375_v25  ;;  %1378 = vst [vmem:[%s1350_s21 + $0x68] sm:$0xff] %v1377_v44 }
 0x1b0 PF: > { %p12_p10 = scmp.ge.s32.totalorder %s1861_s19, 4   ;;  %s2270_s15 = smov %s1810_s16 }
 0x1b1   : > { %s2271_s16 = smov %s1871_s22  ;;  %s2272_s17 = smov %s1861_s19 }
 0x1b2   :  { %14 = sbr.rel (!%p12_p10) target bundleno = 2 (0x2), region = 194 }

</bundles_post_ra>
